<compile_context>
chip_gen: v5e
topology: v5e:2x2
jax: 0.10.0
libtpu: 0.0.40
codegen_flags: <defaults>
</compile_context>

<pallas_src>
from functools import partial

import jax
import jax.numpy as jnp
from jax.experimental import pallas as pl
from jax.experimental.pallas import tpu as pltpu

HIDDEN = 128
IN_PAD = 8      # pad ragged input-feature dim (5 -> 8): clean sublane tile for fc1
OUT_PAD = 128   # lane-dense output (3 -> 128): unmasked vst instead of vst.msk


def _round_up(x, m):
    return (x + m - 1) // m * m


def dqn_kernel(x_ref, w1_ref, b1_ref, w2_ref, b2_ref, w3_ref, b3_ref, o_ref):
    # Fused 3-layer MLP for one batch tile. Weights stay VMEM-resident across
    # grid steps (constant index_maps). bf16 matmul operands, f32 MXU
    # accumulate, f32 bias-add / ReLU. The f32->bf16 cast of x is done here
    # (VPU has slack; avoids a separate XLA convert op outside the kernel).
    x = x_ref[...].astype(jnp.bfloat16)                          # [TB, IN_PAD]
    h1 = jnp.dot(x, w1_ref[...], preferred_element_type=jnp.float32) + b1_ref[...]
    h1 = jnp.maximum(h1, 0.0)
    h2 = jnp.dot(h1.astype(jnp.bfloat16), w2_ref[...],
                 preferred_element_type=jnp.float32) + b2_ref[...]
    h2 = jnp.maximum(h2, 0.0)
    out = jnp.dot(h2.astype(jnp.bfloat16), w3_ref[...],
                  preferred_element_type=jnp.float32) + b3_ref[...]
    o_ref[...] = out                                             # f32 [TB, OUT_PAD]


def _choose_tiling(B, batch_tile, megacore_threshold=1024):
    """Static (trace-time) tiling choice.

    Returns (tb, b_pad, num_tiles) with:
      * tb a multiple of 8, b_pad = tb * num_tiles >= B,
      * padding waste < 8 rows per tile (no rounding B up to a full tile),
      * for large batches an even grid length >= 2 so the 'parallel' batch
        axis can be split across v7x's two TensorCores.
    """
    b8 = _round_up(max(B, 8), 8)
    num_tiles = pl.cdiv(b8, batch_tile)
    if b8 >= megacore_threshold:
        num_tiles = max(num_tiles, 2)
        if num_tiles % 2:
            num_tiles += 1
    tb = _round_up(pl.cdiv(b8, num_tiles), 8)
    b_pad = tb * num_tiles
    return tb, b_pad, num_tiles


@partial(jax.jit, static_argnames=("output_dim", "batch_tile"))
def dqn_forward(x, kparams, output_dim, batch_tile=2048):
    """x: [B, input_dim] float32. kparams: kernel-ready padded params
    (bf16 weights [in_pad, out_pad], f32 biases [1, out_pad]).
    Whole call (pad -> kernel -> slice) is one jitted dispatch."""
    B, F = x.shape
    in_pad = kparams["w1"].shape[0]
    out_pad = kparams["w3"].shape[1]

    tb, b_pad, num_tiles = _choose_tiling(B, batch_tile)

    # Pad feature + batch dims once; x stays f32 (cast to bf16 in-kernel).
    x_p = jnp.pad(x, ((0, b_pad - B), (0, in_pad - F)))

    const = lambda a: pl.BlockSpec(a.shape, lambda i: (0,) * a.ndim)

    out_padded = pl.pallas_call(
        dqn_kernel,
        out_shape=jax.ShapeDtypeStruct((b_pad, out_pad), jnp.float32),
        grid=(num_tiles,),
        in_specs=[
            pl.BlockSpec((tb, in_pad), lambda i: (i, 0)),
            const(kparams["w1"]), const(kparams["b1"]),
            const(kparams["w2"]), const(kparams["b2"]),
            const(kparams["w3"]), const(kparams["b3"]),
        ],
        out_specs=pl.BlockSpec((tb, out_pad), lambda i: (i, 0)),
        compiler_params=pltpu.CompilerParams(
            dimension_semantics=("parallel",)),  # batch axis split across v7x's 2 TCs
    )(x_p, kparams["w1"], kparams["b1"], kparams["w2"], kparams["b2"],
      kparams["w3"], kparams["b3"])

    # Fuses into the same jit (no separate copy kernel). Padded output lanes
    # hold exactly 0; anything consuming out_padded directly (e.g. a fused
    # argmax over 128 lanes) must mask lanes >= output_dim with -inf.
    return out_padded[:B, :output_dim]


def init_params(key, input_dim, output_dim):
    """PyTorch nn.Linear default init (U[-1/sqrt(fan_in), 1/sqrt(fan_in)]),
    f32, unpadded, [in, out] layout."""
    ks = jax.random.split(key, 6)

    def linear(kw, kb, fan_in, fan_out):
        bound = 1.0 / jnp.sqrt(jnp.float32(fan_in))
        w = jax.random.uniform(kw, (fan_in, fan_out), jnp.float32, -bound, bound)
        b = jax.random.uniform(kb, (1, fan_out), jnp.float32, -bound, bound)
        return w, b

    w1, b1 = linear(ks[0], ks[1], input_dim, HIDDEN)
    w2, b2 = linear(ks[2], ks[3], HIDDEN, HIDDEN)
    w3, b3 = linear(ks[4], ks[5], HIDDEN, output_dim)
    return {"w1": w1, "b1": b1, "w2": w2, "b2": b2, "w3": w3, "b3": b3}


def prepare_params(p, input_dim, output_dim, in_pad=IN_PAD, out_pad=OUT_PAD):
    """One-time pad + cast outside the kernel: bf16 weights, f32 biases,
    lane-dense (zero-padded) fc3.
    Note: if this same forward is used for TD-target / loss computation, f32
    weights cost essentially nothing (~68 KB) and remove bf16 rounding error."""
    w1 = jnp.pad(p["w1"], ((0, in_pad - input_dim), (0, 0))).astype(jnp.bfloat16)
    w2 = p["w2"].astype(jnp.bfloat16)
    w3 = jnp.pad(p["w3"], ((0, 0), (0, out_pad - output_dim))).astype(jnp.bfloat16)
    b3 = jnp.pad(p["b3"], ((0, 0), (0, out_pad - output_dim)))
    return {"w1": w1, "b1": p["b1"], "w2": w2, "b2": p["b2"], "w3": w3, "b3": b3}


def dqn_reference_bf16(x, p):
    """Pure-JAX reference using the same bf16-operand / f32-accumulate math."""
    xb = x.astype(jnp.bfloat16)
    h1 = jnp.maximum(jnp.dot(xb, p["w1"].astype(jnp.bfloat16),
                             preferred_element_type=jnp.float32) + p["b1"], 0.0)
    h2 = jnp.maximum(jnp.dot(h1.astype(jnp.bfloat16), p["w2"].astype(jnp.bfloat16),
                             preferred_element_type=jnp.float32) + p["b2"], 0.0)
    return jnp.dot(h2.astype(jnp.bfloat16), p["w3"].astype(jnp.bfloat16),
                   preferred_element_type=jnp.float32) + p["b3"]


def dqn_reference_f32(x, p):
    h1 = jnp.maximum(x @ p["w1"] + p["b1"], 0.0)
    h2 = jnp.maximum(h1 @ p["w2"] + p["b2"], 0.0)
    return h2 @ p["w3"] + p["b3"]


if __name__ == "__main__":
    # Pyrace-v1: observation_space.shape[0] == 5 radar readings,
    # action_space.n == 3 actions. Batch aggregated per perf guidance
    # (>= 256 states per call amortizes launch overhead + weight DMA).
    input_dim, output_dim, batch = 5, 3, 256

    key = jax.random.PRNGKey(0)
    k_params, k_x = jax.random.split(key)
    params = init_params(k_params, input_dim, output_dim)
    kparams = prepare_params(params, input_dim, output_dim)
    x = jax.random.normal(k_x, (batch, input_dim), jnp.float32)

    out = dqn_forward(x, kparams, output_dim)
    out = jax.block_until_ready(out)
    assert out.shape == (batch, output_dim)

    # Tight check against a pure-JAX reference with the same bf16/f32 math.
    ref_bf16 = dqn_reference_bf16(x, params)
    assert jnp.allclose(out, ref_bf16, atol=1e-2, rtol=1e-2), \
        "mismatch vs bf16 JAX reference"

    # Loose check against exact-f32 (PyTorch-equivalent) math: bf16 weights
    # introduce small relative error, acceptable for DQN Q-values.
    ref_f32 = dqn_reference_f32(x, params)
    assert jnp.allclose(out, ref_f32, atol=5e-2, rtol=5e-2), \
        "mismatch vs f32 reference beyond bf16 tolerance"

    # Awkward batch size exercises the adaptive-tiling / padding path
    # (no rounding up to a full tile; only up to the next multiple of 8).
    x_odd = jax.random.normal(jax.random.PRNGKey(1), (37, input_dim), jnp.float32)
    out_odd = jax.block_until_ready(dqn_forward(x_odd, kparams, output_dim))
    assert out_odd.shape == (37, output_dim)
    assert jnp.allclose(out_odd, dqn_reference_bf16(x_odd, params),
                        atol=1e-2, rtol=1e-2), "mismatch on odd batch size"

    print("KERNEL_OK")
</pallas_src>

<mosaic_0001>
module attributes {stable_mosaic.version = 11 : i64} {
  func.func @dqn_kernel(%arg0: i32, %arg1: memref<256x8xf32, #tpu.memory_space<vmem>>, %arg2: memref<8x128xbf16, #tpu.memory_space<vmem>>, %arg3: memref<1x128xf32, #tpu.memory_space<vmem>>, %arg4: memref<128x128xbf16, #tpu.memory_space<vmem>>, %arg5: memref<1x128xf32, #tpu.memory_space<vmem>>, %arg6: memref<128x128xbf16, #tpu.memory_space<vmem>>, %arg7: memref<1x128xf32, #tpu.memory_space<vmem>>, %arg8: memref<256x128xf32, #tpu.memory_space<vmem>>) attributes {dimension_semantics = [#tpu.dimension_semantics<parallel>], iteration_bounds = array<i64: 1>, scalar_prefetch = 0 : i64, scratch_operands = 0 : i64, tpu.core_type = #tpu.core_type<tc>, window_params = [{transform_indices = @transform_0, window_bounds = array<i64: 256, 8>}, {pipeline_mode = #tpu.pipeline_mode<synchronous>, transform_indices = @transform_1, window_bounds = array<i64: 8, 128>}, {pipeline_mode = #tpu.pipeline_mode<synchronous>, transform_indices = @transform_2, window_bounds = array<i64: 1, 128>}, {pipeline_mode = #tpu.pipeline_mode<synchronous>, transform_indices = @transform_3, window_bounds = array<i64: 128, 128>}, {pipeline_mode = #tpu.pipeline_mode<synchronous>, transform_indices = @transform_4, window_bounds = array<i64: 1, 128>}, {pipeline_mode = #tpu.pipeline_mode<synchronous>, transform_indices = @transform_5, window_bounds = array<i64: 128, 128>}, {pipeline_mode = #tpu.pipeline_mode<synchronous>, transform_indices = @transform_6, window_bounds = array<i64: 1, 128>}, {transform_indices = @transform_7, window_bounds = array<i64: 256, 128>}]} {
    %c0 = arith.constant 0 : index
    %c0_0 = arith.constant 0 : index
    %0 = vector.load %arg1[%c0, %c0_0] : memref<256x8xf32, #tpu.memory_space<vmem>>, vector<256x8xf32>
    %1 = arith.truncf %0 : vector<256x8xf32> to vector<256x8xbf16>
    %c0_1 = arith.constant 0 : index
    %c0_2 = arith.constant 0 : index
    %2 = vector.load %arg2[%c0_1, %c0_2] : memref<8x128xbf16, #tpu.memory_space<vmem>>, vector<8x128xbf16>
    %cst = arith.constant dense<0.000000e+00> : vector<256x128xf32>
    %3 = tpu.matmul %1, %2, %cst {dimension_numbers = #tpu.dot_dimension_numbers<[1], [0], [0], [1], [0, 0, 1, 1], [], []>} : vector<256x8xbf16>, vector<8x128xbf16>, vector<256x128xf32> -> vector<256x128xf32>
    %c0_3 = arith.constant 0 : index
    %c0_4 = arith.constant 0 : index
    %4 = vector.load %arg3[%c0_3, %c0_4] : memref<1x128xf32, #tpu.memory_space<vmem>>, vector<1x128xf32>
    %5 = vector.broadcast %4 : vector<1x128xf32> to vector<256x128xf32>
    %6 = arith.addf %3, %5 : vector<256x128xf32>
    %cst_5 = arith.constant 0.000000e+00 : f32
    %7 = vector.broadcast %cst_5 : f32 to vector<256x128xf32>
    %8 = arith.maximumf %6, %7 : vector<256x128xf32>
    %9 = arith.truncf %8 : vector<256x128xf32> to vector<256x128xbf16>
    %c0_6 = arith.constant 0 : index
    %c0_7 = arith.constant 0 : index
    %10 = vector.load %arg4[%c0_6, %c0_7] : memref<128x128xbf16, #tpu.memory_space<vmem>>, vector<128x128xbf16>
    %cst_8 = arith.constant dense<0.000000e+00> : vector<256x128xf32>
    %11 = tpu.matmul %9, %10, %cst_8 {dimension_numbers = #tpu.dot_dimension_numbers<[1], [0], [0], [1], [0, 0, 1, 1], [], []>} : vector<256x128xbf16>, vector<128x128xbf16>, vector<256x128xf32> -> vector<256x128xf32>
    %c0_9 = arith.constant 0 : index
    %c0_10 = arith.constant 0 : index
    %12 = vector.load %arg5[%c0_9, %c0_10] : memref<1x128xf32, #tpu.memory_space<vmem>>, vector<1x128xf32>
    %13 = vector.broadcast %12 : vector<1x128xf32> to vector<256x128xf32>
    %14 = arith.addf %11, %13 : vector<256x128xf32>
    %cst_11 = arith.constant 0.000000e+00 : f32
    %15 = vector.broadcast %cst_11 : f32 to vector<256x128xf32>
    %16 = arith.maximumf %14, %15 : vector<256x128xf32>
    %17 = arith.truncf %16 : vector<256x128xf32> to vector<256x128xbf16>
    %c0_12 = arith.constant 0 : index
    %c0_13 = arith.constant 0 : index
    %18 = vector.load %arg6[%c0_12, %c0_13] : memref<128x128xbf16, #tpu.memory_space<vmem>>, vector<128x128xbf16>
    %cst_14 = arith.constant dense<0.000000e+00> : vector<256x128xf32>
    %19 = tpu.matmul %17, %18, %cst_14 {dimension_numbers = #tpu.dot_dimension_numbers<[1], [0], [0], [1], [0, 0, 1, 1], [], []>} : vector<256x128xbf16>, vector<128x128xbf16>, vector<256x128xf32> -> vector<256x128xf32>
    %c0_15 = arith.constant 0 : index
    %c0_16 = arith.constant 0 : index
    %20 = vector.load %arg7[%c0_15, %c0_16] : memref<1x128xf32, #tpu.memory_space<vmem>>, vector<1x128xf32>
    %21 = vector.broadcast %20 : vector<1x128xf32> to vector<256x128xf32>
    %22 = arith.addf %19, %21 : vector<256x128xf32>
    %c0_17 = arith.constant 0 : index
    %c0_18 = arith.constant 0 : index
    %23 = vector.load %arg8[%c0_17, %c0_18] : memref<256x128xf32, #tpu.memory_space<vmem>>, vector<256x128xf32>
    tpu.vector_store %arg8[%c0_17, %c0_18], %22 {strides = array<i32>} : memref<256x128xf32, #tpu.memory_space<vmem>>, vector<256x128xf32>,
    return
  }
  func.func @transform_0(%arg0: i32) -> (i32, i32) {
    %c0_i32 = arith.constant 0 : i32
    %c0_i32_0 = arith.constant 0 : i32
    return %arg0, %c0_i32 : i32, i32
  }
  func.func @transform_1(%arg0: i32) -> (i32, i32) {
    %c0_i32 = arith.constant 0 : i32
    %c0_i32_0 = arith.constant 0 : i32
    %c0_i32_1 = arith.constant 0 : i32
    return %c0_i32, %c0_i32_0 : i32, i32
  }
  func.func @transform_2(%arg0: i32) -> (i32, i32) {
    %c0_i32 = arith.constant 0 : i32
    %c0_i32_0 = arith.constant 0 : i32
    %c0_i32_1 = arith.constant 0 : i32
    return %c0_i32, %c0_i32_0 : i32, i32
  }
  func.func @transform_3(%arg0: i32) -> (i32, i32) {
    %c0_i32 = arith.constant 0 : i32
    %c0_i32_0 = arith.constant 0 : i32
    %c0_i32_1 = arith.constant 0 : i32
    return %c0_i32, %c0_i32_0 : i32, i32
  }
  func.func @transform_4(%arg0: i32) -> (i32, i32) {
    %c0_i32 = arith.constant 0 : i32
    %c0_i32_0 = arith.constant 0 : i32
    %c0_i32_1 = arith.constant 0 : i32
    return %c0_i32, %c0_i32_0 : i32, i32
  }
  func.func @transform_5(%arg0: i32) -> (i32, i32) {
    %c0_i32 = arith.constant 0 : i32
    %c0_i32_0 = arith.constant 0 : i32
    %c0_i32_1 = arith.constant 0 : i32
    return %c0_i32, %c0_i32_0 : i32, i32
  }
  func.func @transform_6(%arg0: i32) -> (i32, i32) {
    %c0_i32 = arith.constant 0 : i32
    %c0_i32_0 = arith.constant 0 : i32
    %c0_i32_1 = arith.constant 0 : i32
    return %c0_i32, %c0_i32_0 : i32, i32
  }
  func.func @transform_7(%arg0: i32) -> (i32, i32) {
    %c0_i32 = arith.constant 0 : i32
    %c0_i32_0 = arith.constant 0 : i32
    return %arg0, %c0_i32 : i32, i32
  }
}

</mosaic_0001>

<bundles_post_ra>
// kernel: dqn_forward.1
= control target key start
LH: loop header
LB: loop body
LE: loop exit
PB: predicated region body
PF: predicated region fallthrough
CT: control target
= control target key end

     0   :  { %vm129_vm0 = vcmask 1043456   ;;  %vm80_vm1 = vcmask 64512   ;;  %s1194_s1 = inlined_call_operand.vmem [shape: bf16[8,128], index: 1, kind: input, shape index: {}]   ;;  %s1195_s0 = inlined_call_operand.vmem [shape: f32[256,8], index: 0, kind: input, shape index: {}]   ;;  %s1196_s2 = inlined_call_operand.vmem [shape: f32[1,128], index: 2, kind: input, shape index: {}]   ;;  %s1197_s3 = inlined_call_operand.vmem [shape: bf16[128,128], index: 3, kind: input, shape index: {}]   ;;  %s1198_s4 = inlined_call_operand.vmem [shape: f32[1,128], index: 4, kind: input, shape index: {}]   ;;  %s1199_s5 = inlined_call_operand.vmem [shape: bf16[128,128], index: 5, kind: input, shape index: {}]   ;;  %s1200_s6 = inlined_call_operand.vmem [shape: f32[1,128], index: 6, kind: input, shape index: {}]   ;;  %s1201_s7 = inlined_call_operand.vmem [shape: f32[256,128], index: 7, kind: output, shape index: {}]  }
   0x1   :  { %v75_v0 = vld [vmem:[%s1194_s1] sm:$0xf]  ;;  %v28_v2 = vld [vmem:[%s1195_s0 + $0x8] sm:$0xff]  ;;  %v29_v5 = vld [vmem:[%s1195_s0 + $0x10] sm:$0xff] }
   0x2   :  { %v27_v1 = vld [vmem:[%s1195_s0] sm:$0xff]  ;;  %v131_v3 = vsel %vm129_vm0, %v75_v0, 0  ;;  %v30_v6 = vld [vmem:[%s1195_s0 + $0x18] sm:$0xff]  ;;  %v32_v9 = vld [vmem:[%s1195_s0 + $0x28] sm:$0xff] }
   0x3   :  { %v59_v4 = vpack.c.bf16 %v28_v2, %v27_v1  ;;  %140 = vmatpush.bf16.msra.mxu0 %v131_v3  ;;  %764 = vmatpush.bf16.msra.mxu3 %v131_v3  ;;  %v60_v7 = vpack.c.bf16 %v30_v6, %v29_v5  ;;  %v31_v8 = vld [vmem:[%s1195_s0 + $0x20] sm:$0xff]  ;;  %v33_v11 = vld [vmem:[%s1195_s0 + $0x30] sm:$0xff]  ;;  %v34_v12 = vld [vmem:[%s1195_s0 + $0x38] sm:$0xff] }
   0x4   :  { %v61_v10 = vpack.c.bf16 %v32_v9, %v31_v8  ;;  %v62_v13 = vpack.c.bf16 %v34_v12, %v33_v11  ;;  %v35_v14 = vld [vmem:[%s1195_s0 + $0x40] sm:$0xff]  ;;  %v36_v15 = vld [vmem:[%s1195_s0 + $0x48] sm:$0xff]  ;;  %v755_v17 = vld [vmem:[%s1197_s3 + $0x38] sm:$0xff] }
   0x5   :  { %v63_v16 = vpack.c.bf16 %v36_v15, %v35_v14  ;;  %338 = vmatpush.bf16.msra.mxu1 %v755_v17  ;;  %v37_v18 = vld [vmem:[%s1195_s0 + $0x50] sm:$0xff]  ;;  %v38_v19 = vld [vmem:[%s1195_s0 + $0x58] sm:$0xff]  ;;  %v753_v22 = vld [vmem:[%s1197_s3 + $0x28] sm:$0xff] }
   0x6   :  { %668 = vmatmul.msk.bf16.vlgmr.msra.gmra.mxu0 %vm80_vm1, %v59_v4  ;;  %v64_v20 = vpack.c.bf16 %v38_v19, %v37_v18  ;;  %v754_v21 = vld [vmem:[%s1197_s3 + $0x30] sm:$0xff]  ;;  %v752_v23 = vld [vmem:[%s1197_s3 + $0x20] sm:$0xff]  ;;  %v40_v25 = vld [vmem:[%s1195_s0 + $0x68] sm:$0xff] }
   0x7   :  { %765 = vmatpush.bf16.msrb.mxu3 %v755_v17  ;;  %v39_v24 = vld [vmem:[%s1195_s0 + $0x60] sm:$0xff]  ;;  %v751_v26 = vld [vmem:[%s1197_s3 + $0x18] sm:$0xff]  ;;  %v750_v28 = vld [vmem:[%s1197_s3 + $0x10] sm:$0xff] }
   0x8   :  { %v65_v27 = vpack.c.bf16 %v40_v25, %v39_v24  ;;  %v749_v29 = vld [vmem:[%s1197_s3 + $0x8] sm:$0xff]  ;;  %v748_v30 = vld [vmem:[%s1197_s3] sm:$0xff]  ;;  %v41_v31 = vld [vmem:[%s1195_s0 + $0x70] sm:$0xff] }
   0x9   :  { %339 = vmatpush.bf16.msra.mxu1 %v754_v21  ;;  %v42_v32 = vld [vmem:[%s1195_s0 + $0x78] sm:$0xff]  ;;  %v43_v34 = vld [vmem:[%s1195_s0 + $0x80] sm:$0xff]  ;;  %v44_v35 = vld [vmem:[%s1195_s0 + $0x88] sm:$0xff] }
   0xa   :  { %v66_v33 = vpack.c.bf16 %v42_v32, %v41_v31  ;;  %v67_v36 = vpack.c.bf16 %v44_v35, %v43_v34  ;;  %v916_v38 = vld [vmem:[%s1196_s2] ss:$0 sm:$0xff]  ;;  %v45_v44 = vld [vmem:[%s1195_s0 + $0x90] sm:$0xff]  ;;  %v46_v45 = vld [vmem:[%s1195_s0 + $0x98] sm:$0xff] }
   0xb   :  { %766 = vmatpush.bf16.msrb.mxu3 %v754_v21  ;;  %v68_v47 = vpack.c.bf16 %v46_v45, %v45_v44  ;;  %v47_v54 = vld [vmem:[%s1195_s0 + $0xa0] sm:$0xff]  ;;  %v48_v55 = vld [vmem:[%s1195_s0 + $0xa8] sm:$0xff]  ;;  %v53_v59 = vld [vmem:[%s1195_s0 + $0xd0] sm:$0xff] }
   0xc   :  { %v69_v57 = vpack.c.bf16 %v48_v55, %v47_v54  ;;  %v54_v60 = vld [vmem:[%s1195_s0 + $0xd8] sm:$0xff]  ;;  %v49_v3 = vld [vmem:[%s1195_s0 + $0xb0] sm:$0xff]  ;;  %v55_v8 = vld [vmem:[%s1195_s0 + $0xe0] sm:$0xff] }
   0xd   :  { %340 = vmatpush.bf16.msra.mxu1 %v753_v22  ;;  %v72_v61 = vpack.c.bf16 %v54_v60, %v53_v59  ;;  %v50_v4 = vld [vmem:[%s1195_s0 + $0xb8] sm:$0xff]  ;;  %v56_v9 = vld [vmem:[%s1195_s0 + $0xe8] sm:$0xff]  ;;  %v57_v21 = vld [vmem:[%s1195_s0 + $0xf0] sm:$0xff] }
   0xe   :  { %v70_v6 = vpack.c.bf16 %v50_v4, %v49_v3  ;;  %v52_v17 = vld [vmem:[%s1195_s0 + $0xc8] sm:$0xff]  ;;  %v763_v34 = vld [vmem:[%s1199_s5 + $0x38] sm:$0xff]  ;;  %v1013_v4 = vld [vmem:[%s1198_s4] ss:$0 sm:$0xff] }
   0xf   :  { %767 = vmatpush.bf16.msrb.mxu3 %v753_v22  ;;  %v58_v22 = vld [vmem:[%s1195_s0 + $0xf8] sm:$0xff]  ;;  %543 = vmatpush.bf16.msra.mxu2 %v763_v34 }
  0x10   :  { %681 = vmatmul.msk.bf16.vlgmr.msra.gmra.mxu3 %vm80_vm1, %v72_v61 }
  0x11   :  { %341 = vmatpush.bf16.msra.mxu1 %v752_v23 }
  0x13   :  { %768 = vmatpush.bf16.msrb.mxu3 %v752_v23  ;;  %v74_v23 = vpack.c.bf16 %v58_v22, %v57_v21 }
  0x15   :  { %342 = vmatpush.bf16.msra.mxu1 %v751_v26 }
  0x16   :  { %669 = vmatmul.msk.bf16.gmra.mxu0 %vm80_vm1, %v60_v7 }
  0x17   :  { %769 = vmatpush.bf16.msrb.mxu3 %v751_v26 }
  0x19   :  { %343 = vmatpush.bf16.msra.mxu1 %v750_v28 }
  0x1b   :  { %770 = vmatpush.bf16.msrb.mxu3 %v750_v28 }
  0x1d   :  { %344 = vmatpush.bf16.msra.mxu1 %v749_v29 }
  0x1f   :  { %771 = vmatpush.bf16.msrb.mxu3 %v749_v29 }
  0x21   :  { %345 = vmatpush.bf16.msra.mxu1 %v748_v30 }
  0x23   :  { %772 = vmatpush.bf16.msrb.mxu3 %v748_v30 }
  0x26   :  { %670 = vmatmul.msk.bf16.gmra.mxu0 %vm80_vm1, %v61_v10  ;;  %v73_v10 = vpack.c.bf16 %v56_v9, %v55_v8 }
  0x27   :  { %773 = vmatpush.bf16.msra.mxu3 %v763_v34 }
  0x28   :  { %682 = vmatmul.msk.bf16.gmra.mxu3 %vm80_vm1, %v73_v10 }
  0x36   :  { %671 = vmatmul.msk.bf16.gmra.mxu0 %vm80_vm1, %v62_v13 }
  0x38   :  { %683 = vmatmul.msk.bf16.gmra.mxu3 %vm80_vm1, %v74_v23 }
  0x46   :  { %672 = vmatmul.msk.bf16.gmra.mxu0 %vm80_vm1, %v63_v16  ;;  %v51_v16 = vld [vmem:[%s1195_s0 + $0xc0] sm:$0xff] }
  0x47   :  { %v71_v19 = vpack.c.bf16 %v52_v17, %v51_v16 }
  0x56   :  { %673 = vmatmul.msk.bf16.gmra.mxu0 %vm80_vm1, %v64_v20 }
  0x66   :  { %674 = vmatmul.msk.bf16.gmra.mxu0 %vm80_vm1, %v65_v27 }
  0x76   :  { %675 = vmatmul.msk.bf16.gmra.mxu0 %vm80_vm1, %v66_v33 }
  0x83   :  { %v142_v37 = vpop.f32.mrf.mxu0 }
  0x84   :  { %v143_v39 = vadd.f32 %v916_v38, %v142_v37 }
  0x86   :  { %676 = vmatmul.msk.bf16.gmra.mxu0 %vm80_vm1, %v67_v36  ;;  %v222_v42 = vmax.f32 %v143_v39, 0.0  ;;  %v762_v39 = vld [vmem:[%s1199_s5 + $0x30] sm:$0xff] }
  0x87   :  { %544 = vmatpush.bf16.msra.mxu2 %v762_v39  ;;  %774 = vmatpush.bf16.msra.mxu3 %v762_v39 }
  0x8b   :  { %v144_v40 = vpop.f32.mrf.mxu0 }
  0x8c   :  { %v145_v41 = vadd.f32 %v916_v38, %v144_v40 }
  0x8e   :  { %v223_v43 = vmax.f32 %v145_v41, 0.0  ;;  %v761_v41 = vld [vmem:[%s1199_s5 + $0x28] sm:$0xff] }
  0x8f   :  { %545 = vmatpush.bf16.msra.mxu2 %v761_v41  ;;  %775 = vmatpush.bf16.msra.mxu3 %v761_v41 }
  0x90   :  { %v254_v46 = vpack.c.bf16 %v223_v43, %v222_v42  ;;  %v760_v42 = vld [vmem:[%s1199_s5 + $0x20] sm:$0xff] }
  0x92   :  { %346 = vmatmul.bf16.vlgmr.msra.gmra.mxu1 %v254_v46  ;;  %v759_v46 = vld [vmem:[%s1199_s5 + $0x18] sm:$0xff] }
  0x93   :  { %v147_v48 = vpop.f32.mrf.mxu0  ;;  %546 = vmatpush.bf16.msra.mxu2 %v760_v42  ;;  %776 = vmatpush.bf16.msra.mxu3 %v760_v42 }
  0x94   :  { %v148_v49 = vadd.f32 %v916_v38, %v147_v48 }
  0x96   :  { %677 = vmatmul.msk.bf16.gmra.mxu0 %vm80_vm1, %v68_v47  ;;  %v224_v52 = vmax.f32 %v148_v49, 0.0 }
  0x97   :  { %547 = vmatpush.bf16.msra.mxu2 %v759_v46  ;;  %777 = vmatpush.bf16.msra.mxu3 %v759_v46 }
  0x9b   :  { %v149_v50 = vpop.f32.mrf.mxu0 }
  0x9c   :  { %v150_v51 = vadd.f32 %v916_v38, %v149_v50  ;;  %v758_v50 = vld [vmem:[%s1199_s5 + $0x10] sm:$0xff] }
  0x9d   :  { %548 = vmatpush.bf16.msra.mxu2 %v758_v50  ;;  %778 = vmatpush.bf16.msra.mxu3 %v758_v50 }
  0x9e   :  { %v225_v53 = vmax.f32 %v150_v51, 0.0 }
  0xa0   :  { %v255_v56 = vpack.c.bf16 %v225_v53, %v224_v52  ;;  %v757_v52 = vld [vmem:[%s1199_s5 + $0x8] sm:$0xff]  ;;  %v756_v53 = vld [vmem:[%s1199_s5] sm:$0xff] }
  0xa1   :  { %549 = vmatpush.bf16.msra.mxu2 %v757_v52  ;;  %779 = vmatpush.bf16.msra.mxu3 %v757_v52 }
  0xa2   :  { %351 = vmatmul.bf16.gmra.mxu1 %v255_v56 }
  0xa3   :  { %v152_v58 = vpop.f32.mrf.mxu0 }
  0xa4   :  { %v153_v62 = vadd.f32 %v916_v38, %v152_v58 }
  0xa5   :  { %550 = vmatpush.bf16.msra.mxu2 %v756_v53  ;;  %780 = vmatpush.bf16.msra.mxu3 %v756_v53 }
  0xa6   :  { %678 = vmatmul.msk.bf16.gmra.mxu0 %vm80_vm1, %v69_v57  ;;  %v226_v1 = vmax.f32 %v153_v62, 0.0 }
  0xab   :  { %v154_v63 = vpop.f32.mrf.mxu0 }
  0xac   :  { %v155_v0 = vadd.f32 %v916_v38, %v154_v63 }
  0xae   :  { %v227_v2 = vmax.f32 %v155_v0, 0.0 }
  0xb0   :  { %v256_v5 = vpack.c.bf16 %v227_v2, %v226_v1 }
  0xb2   :  { %356 = vmatmul.bf16.gmra.mxu1 %v256_v5 }
  0xb3   :  { %v157_v7 = vpop.f32.mrf.mxu0 }
  0xb4   :  { %v158_v11 = vadd.f32 %v916_v38, %v157_v7 }
  0xb6   :  { %679 = vmatmul.msk.bf16.gmra.mxu0 %vm80_vm1, %v70_v6  ;;  %v228_v14 = vmax.f32 %v158_v11, 0.0 }
  0xbb   :  { %v159_v12 = vpop.f32.mrf.mxu0 }
  0xbc   :  { %v160_v13 = vadd.f32 %v916_v38, %v159_v12 }
  0xbe   :  { %v229_v15 = vmax.f32 %v160_v13, 0.0 }
  0xc0   :  { %v257_v18 = vpack.c.bf16 %v229_v15, %v228_v14 }
  0xc2   :  { %361 = vmatmul.bf16.gmra.mxu1 %v257_v18 }
  0xc3   :  { %v162_v20 = vpop.f32.mrf.mxu0 }
  0xc4   :  { %v163_v24 = vadd.f32 %v916_v38, %v162_v20 }
  0xc6   :  { %680 = vmatmul.msk.bf16.gmra.mxu0 %vm80_vm1, %v71_v19  ;;  %v230_v27 = vmax.f32 %v163_v24, 0.0 }
  0xcb   :  { %v164_v25 = vpop.f32.mrf.mxu0 }
  0xcc   :  { %v165_v26 = vadd.f32 %v916_v38, %v164_v25 }
  0xce   :  { %v231_v28 = vmax.f32 %v165_v26, 0.0 }
  0xd0   :  { %v258_v29 = vpack.c.bf16 %v231_v28, %v230_v27 }
  0xd2   :  { %366 = vmatmul.bf16.gmra.mxu1 %v258_v29 }
  0xd3   :  { %v167_v30 = vpop.f32.mrf.mxu0 }
  0xd4   :  { %v168_v31 = vadd.f32 %v916_v38, %v167_v30 }
  0xd6   :  { %v232_v35 = vmax.f32 %v168_v31, 0.0 }
  0xdb   :  { %v169_v32 = vpop.f32.mrf.mxu0 }
  0xdc   :  { %v170_v33 = vadd.f32 %v916_v38, %v169_v32 }
  0xde   :  { %v233_v36 = vmax.f32 %v170_v33, 0.0 }
  0xe0   :  { %v259_v37 = vpack.c.bf16 %v233_v36, %v232_v35 }
  0xe2   :  { %371 = vmatmul.bf16.gmra.mxu1 %v259_v37 }
  0xe3   :  { %v172_v40 = vpop.f32.mrf.mxu0 }
  0xe4   :  { %v173_v43 = vadd.f32 %v916_v38, %v172_v40 }
  0xe6   :  { %v234_v47 = vmax.f32 %v173_v43, 0.0 }
  0xeb   :  { %v174_v44 = vpop.f32.mrf.mxu0 }
  0xec   :  { %v175_v45 = vadd.f32 %v916_v38, %v174_v44 }
  0xee   :  { %v235_v48 = vmax.f32 %v175_v45, 0.0 }
  0xf0   :  { %v260_v49 = vpack.c.bf16 %v235_v48, %v234_v47 }
  0xf2   :  { %376 = vmatmul.bf16.gmra.mxu1 %v260_v49  ;;  %v207_v49 = vpop.f32.mrf.mxu3 }
  0xf3   :  { %v177_v51 = vpop.f32.mrf.mxu0 }
  0xf4   :  { %v178_v54 = vadd.f32 %v916_v38, %v177_v51 }
  0xf6   :  { %v236_v57 = vmax.f32 %v178_v54, 0.0 }
  0xfb   :  { %v179_v55 = vpop.f32.mrf.mxu0 }
  0xfc   :  { %v180_v56 = vadd.f32 %v916_v38, %v179_v55 }
  0xfe   :  { %v237_v58 = vmax.f32 %v180_v56, 0.0 }
 0x100   :  { %v261_v59 = vpack.c.bf16 %v237_v58, %v236_v57 }
 0x102   :  { %381 = vmatmul.bf16.gmra.mxu1 %v261_v59  ;;  %v209_v59 = vpop.f32.mrf.mxu3 }
 0x103   :  { %v182_v60 = vpop.f32.mrf.mxu0 }
 0x104   :  { %v183_v61 = vadd.f32 %v916_v38, %v182_v60 }
 0x106   :  { %v238_v0 = vmax.f32 %v183_v61, 0.0 }
 0x10b   :  { %v184_v62 = vpop.f32.mrf.mxu0 }
 0x10c   :  { %v185_v63 = vadd.f32 %v916_v38, %v184_v62 }
 0x10e   :  { %v239_v1 = vmax.f32 %v185_v63, 0.0 }
 0x10f   :  { %v347_v2 = vpop.f32.mrf.mxu1 }
 0x110   :  { %v262_v3 = vpack.c.bf16 %v239_v1, %v238_v0  ;;  %v348_v6 = vadd.f32 %v1013_v4, %v347_v2  ;;  %v212_v2 = vpop.f32.mrf.mxu3 }
 0x112   :  { %386 = vmatmul.bf16.gmra.mxu1 %v262_v3  ;;  %v427_v9 = vmax.f32 %v348_v6, 0.0  ;;  %v208_v3 = vadd.f32 %v916_v38, %v207_v49 }
 0x113   :  { %v187_v5 = vpop.f32.mrf.mxu0 }
 0x114   :  { %v188_v10 = vadd.f32 %v916_v38, %v187_v5  ;;  %v210_v5 = vadd.f32 %v916_v38, %v209_v59 }
 0x116   :  { %v240_v15 = vmax.f32 %v188_v10, 0.0  ;;  %v249_v10 = vmax.f32 %v210_v5, 0.0 }
 0x117   :  { %v349_v7 = vpop.f32.mrf.mxu1 }
 0x118   :  { %v350_v8 = vadd.f32 %v1013_v4, %v349_v7 }
 0x11a   :  { %v428_v11 = vmax.f32 %v350_v8, 0.0 }
 0x11b   :  { %v189_v12 = vpop.f32.mrf.mxu0 }
 0x11c   :  { %v190_v13 = vadd.f32 %v916_v38, %v189_v12  ;;  %v459_v14 = vpack.c.bf16 %v428_v11, %v427_v9  ;;  %v248_v9 = vmax.f32 %v208_v3, 0.0 }
 0x11e   :  { %v241_v16 = vmax.f32 %v190_v13, 0.0  ;;  %551 = vmatmul.bf16.vlgmr.msra.gmra.mxu2 %v459_v14  ;;  %v267_v13 = vpack.c.bf16 %v249_v10, %v248_v9  ;;  %v214_v14 = vpop.f32.mrf.mxu3 }
 0x11f   :  { %v352_v17 = vpop.f32.mrf.mxu1 }
 0x120   :  { %v263_v18 = vpack.c.bf16 %v241_v16, %v240_v15  ;;  %v353_v20 = vadd.f32 %v1013_v4, %v352_v17  ;;  %v213_v17 = vadd.f32 %v916_v38, %v212_v2 }
 0x122   :  { %391 = vmatmul.bf16.gmra.mxu1 %v263_v18  ;;  %v429_v23 = vmax.f32 %v353_v20, 0.0  ;;  %v215_v18 = vadd.f32 %v916_v38, %v214_v14 }
 0x123   :  { %v192_v19 = vpop.f32.mrf.mxu0 }
 0x124   :  { %v193_v24 = vadd.f32 %v916_v38, %v192_v19 }
 0x126   :  { %v242_v29 = vmax.f32 %v193_v24, 0.0  ;;  %v251_v24 = vmax.f32 %v215_v18, 0.0 }
 0x127   :  { %v354_v21 = vpop.f32.mrf.mxu1 }
 0x128   :  { %v355_v22 = vadd.f32 %v1013_v4, %v354_v21 }
 0x12a   :  { %v430_v25 = vmax.f32 %v355_v22, 0.0  ;;  %v217_v22 = vpop.f32.mrf.mxu3 }
 0x12b   :  { %v194_v26 = vpop.f32.mrf.mxu0 }
 0x12c   :  { %v195_v27 = vadd.f32 %v916_v38, %v194_v26  ;;  %v460_v28 = vpack.c.bf16 %v430_v25, %v429_v23  ;;  %v250_v23 = vmax.f32 %v213_v17, 0.0 }
 0x12e   :  { %v243_v30 = vmax.f32 %v195_v27, 0.0  ;;  %556 = vmatmul.bf16.gmra.mxu2 %v460_v28  ;;  %v268_v27 = vpack.c.bf16 %v251_v24, %v250_v23 }
 0x12f   :  { %v357_v31 = vpop.f32.mrf.mxu1 }
 0x130   :  { %v264_v32 = vpack.c.bf16 %v243_v30, %v242_v29  ;;  %v358_v34 = vadd.f32 %v1013_v4, %v357_v31  ;;  %v218_v31 = vadd.f32 %v916_v38, %v217_v22 }
 0x132   :  { %396 = vmatmul.bf16.gmra.mxu1 %v264_v32  ;;  %v431_v37 = vmax.f32 %v358_v34, 0.0  ;;  %v219_v28 = vpop.f32.mrf.mxu3 }
 0x133   :  { %v197_v33 = vpop.f32.mrf.mxu0  ;;  %v220_v32 = vadd.f32 %v916_v38, %v219_v28 }
 0x134   :  { %v198_v39 = vadd.f32 %v916_v38, %v197_v33 }
 0x136   :  { %v244_v44 = vmax.f32 %v198_v39, 0.0 }
 0x137   :  { %v359_v35 = vpop.f32.mrf.mxu1 }
 0x138   :  { %v360_v36 = vadd.f32 %v1013_v4, %v359_v35 }
 0x13a   :  { %v432_v40 = vmax.f32 %v360_v36, 0.0  ;;  %v252_v36 = vmax.f32 %v218_v31, 0.0 }
 0x13b   :  { %v199_v41 = vpop.f32.mrf.mxu0 }
 0x13c   :  { %v200_v42 = vadd.f32 %v916_v38, %v199_v41  ;;  %v461_v43 = vpack.c.bf16 %v432_v40, %v431_v37  ;;  %v253_v37 = vmax.f32 %v220_v32, 0.0 }
 0x13e   :  { %v245_v45 = vmax.f32 %v200_v42, 0.0  ;;  %561 = vmatmul.bf16.gmra.mxu2 %v461_v43  ;;  %v269_v41 = vpack.c.bf16 %v253_v37, %v252_v36 }
 0x13f   :  { %v362_v46 = vpop.f32.mrf.mxu1 }
 0x140   :  { %v265_v47 = vpack.c.bf16 %v245_v45, %v244_v44  ;;  %v363_v50 = vadd.f32 %v1013_v4, %v362_v46 }
 0x142   :  { %401 = vmatmul.bf16.gmra.mxu1 %v265_v47  ;;  %v433_v53 = vmax.f32 %v363_v50, 0.0 }
 0x143   :  { %v202_v48 = vpop.f32.mrf.mxu0 }
 0x144   :  { %v203_v54 = vadd.f32 %v916_v38, %v202_v48 }
 0x146   :  { %v246_v60 = vmax.f32 %v203_v54, 0.0  ;;  %v1050_v54 = vld [vmem:[%s1200_s6] ss:$0 sm:$0xff] }
 0x147   :  { %v364_v51 = vpop.f32.mrf.mxu1 }
 0x148   :  { %v365_v52 = vadd.f32 %v1013_v4, %v364_v51 }
 0x14a   :  { %v434_v55 = vmax.f32 %v365_v52, 0.0 }
 0x14b   :  { %v204_v56 = vpop.f32.mrf.mxu0 }
 0x14c   :  { %v205_v57 = vadd.f32 %v916_v38, %v204_v56  ;;  %v462_v58 = vpack.c.bf16 %v434_v55, %v433_v53 }
 0x14e   :  { %v247_v61 = vmax.f32 %v205_v57, 0.0  ;;  %566 = vmatmul.bf16.gmra.mxu2 %v462_v58 }
 0x14f   :  { %v367_v62 = vpop.f32.mrf.mxu1 }
 0x150   :  { %v266_v63 = vpack.c.bf16 %v247_v61, %v246_v60  ;;  %v368_v0 = vadd.f32 %v1013_v4, %v367_v62 }
 0x152   :  { %406 = vmatmul.bf16.vlgmr.msrb.gmra.mxu3 %v266_v63  ;;  %v435_v7 = vmax.f32 %v368_v0, 0.0 }
 0x157   :  { %v369_v1 = vpop.f32.mrf.mxu1 }
 0x158   :  { %v370_v6 = vadd.f32 %v1013_v4, %v369_v1 }
 0x15a   :  { %v436_v8 = vmax.f32 %v370_v6, 0.0 }
 0x15c   :  { %v463_v11 = vpack.c.bf16 %v436_v8, %v435_v7 }
 0x15e   :  { %571 = vmatmul.bf16.gmra.mxu2 %v463_v11 }
 0x15f   :  { %v372_v12 = vpop.f32.mrf.mxu1 }
 0x160   :  { %v373_v15 = vadd.f32 %v1013_v4, %v372_v12 }
 0x162   :  { %411 = vmatmul.bf16.gmra.mxu3 %v267_v13  ;;  %v437_v20 = vmax.f32 %v373_v15, 0.0 }
 0x167   :  { %v374_v16 = vpop.f32.mrf.mxu1 }
 0x168   :  { %v375_v19 = vadd.f32 %v1013_v4, %v374_v16 }
 0x16a   :  { %v438_v21 = vmax.f32 %v375_v19, 0.0 }
 0x16c   :  { %v464_v25 = vpack.c.bf16 %v438_v21, %v437_v20 }
 0x16e   :  { %576 = vmatmul.bf16.gmra.mxu2 %v464_v25 }
 0x16f   :  { %v377_v26 = vpop.f32.mrf.mxu1 }
 0x170   :  { %v378_v29 = vadd.f32 %v1013_v4, %v377_v26 }
 0x172   :  { %416 = vmatmul.bf16.gmra.mxu3 %v268_v27  ;;  %v439_v34 = vmax.f32 %v378_v29, 0.0 }
 0x177   :  { %v379_v30 = vpop.f32.mrf.mxu1 }
 0x178   :  { %v380_v33 = vadd.f32 %v1013_v4, %v379_v30 }
 0x17a   :  { %v440_v35 = vmax.f32 %v380_v33, 0.0 }
 0x17c   :  { %v465_v39 = vpack.c.bf16 %v440_v35, %v439_v34 }
 0x17e   :  { %581 = vmatmul.bf16.gmra.mxu2 %v465_v39 }
 0x17f   :  { %v382_v40 = vpop.f32.mrf.mxu1 }
 0x180   :  { %v383_v42 = vadd.f32 %v1013_v4, %v382_v40 }
 0x182   :  { %421 = vmatmul.bf16.gmra.mxu3 %v269_v41  ;;  %v441_v45 = vmax.f32 %v383_v42, 0.0 }
 0x187   :  { %v384_v43 = vpop.f32.mrf.mxu1 }
 0x188   :  { %v385_v44 = vadd.f32 %v1013_v4, %v384_v43 }
 0x18a   :  { %v442_v46 = vmax.f32 %v385_v44, 0.0 }
 0x18c   :  { %v466_v47 = vpack.c.bf16 %v442_v46, %v441_v45 }
 0x18e   :  { %586 = vmatmul.bf16.gmra.mxu2 %v466_v47 }
 0x18f   :  { %v387_v38 = vpop.f32.mrf.mxu1 }
 0x190   :  { %v388_v48 = vadd.f32 %v1013_v4, %v387_v38 }
 0x192   :  { %v443_v51 = vmax.f32 %v388_v48, 0.0 }
 0x197   :  { %v389_v49 = vpop.f32.mrf.mxu1 }
 0x198   :  { %v390_v50 = vadd.f32 %v1013_v4, %v389_v49 }
 0x19a   :  { %v444_v52 = vmax.f32 %v390_v50, 0.0 }
 0x19c   :  { %v467_v53 = vpack.c.bf16 %v444_v52, %v443_v51 }
 0x19e   :  { %591 = vmatmul.bf16.gmra.mxu2 %v467_v53 }
 0x19f   :  { %v392_v55 = vpop.f32.mrf.mxu1 }
 0x1a0   :  { %v393_v58 = vadd.f32 %v1013_v4, %v392_v55 }
 0x1a1   :  { %v552_v56 = vpop.f32.mrf.mxu2 }
 0x1a2   :  { %v553_v57 = vadd.f32 %v1050_v54, %v552_v56  ;;  %v445_v62 = vmax.f32 %v393_v58, 0.0 }
 0x1a4   :  { %632 = vst [vmem:[%s1201_s7] sm:$0xff] %v553_v57 }
 0x1a7   :  { %v394_v59 = vpop.f32.mrf.mxu1 }
 0x1a8   :  { %v395_v60 = vadd.f32 %v1013_v4, %v394_v59 }
 0x1a9   :  { %v554_v61 = vpop.f32.mrf.mxu2 }
 0x1aa   :  { %v446_v63 = vmax.f32 %v395_v60, 0.0  ;;  %v555_v0 = vadd.f32 %v1050_v54, %v554_v61 }
 0x1ac   :  { %633 = vst [vmem:[%s1201_s7 + $0x8] sm:$0xff] %v555_v0  ;;  %v468_v1 = vpack.c.bf16 %v446_v63, %v445_v62 }
 0x1ae   :  { %596 = vmatmul.bf16.gmra.mxu2 %v468_v1 }
 0x1af   :  { %v397_v2 = vpop.f32.mrf.mxu1 }
 0x1b0   :  { %v398_v6 = vadd.f32 %v1013_v4, %v397_v2 }
 0x1b1   :  { %v557_v3 = vpop.f32.mrf.mxu2 }
 0x1b2   :  { %v558_v5 = vadd.f32 %v1050_v54, %v557_v3  ;;  %v447_v10 = vmax.f32 %v398_v6, 0.0 }
 0x1b4   :  { %634 = vst [vmem:[%s1201_s7 + $0x10] sm:$0xff] %v558_v5 }
 0x1b7   :  { %v399_v7 = vpop.f32.mrf.mxu1 }
 0x1b8   :  { %v400_v8 = vadd.f32 %v1013_v4, %v399_v7 }
 0x1b9   :  { %v559_v9 = vpop.f32.mrf.mxu2 }
 0x1ba   :  { %v448_v11 = vmax.f32 %v400_v8, 0.0  ;;  %v560_v12 = vadd.f32 %v1050_v54, %v559_v9 }
 0x1bc   :  { %635 = vst [vmem:[%s1201_s7 + $0x18] sm:$0xff] %v560_v12  ;;  %v469_v13 = vpack.c.bf16 %v448_v11, %v447_v10 }
 0x1be   :  { %601 = vmatmul.bf16.gmra.mxu2 %v469_v13 }
 0x1bf   :  { %v402_v14 = vpop.f32.mrf.mxu1 }
 0x1c0   :  { %v403_v17 = vadd.f32 %v1013_v4, %v402_v14 }
 0x1c1   :  { %v562_v15 = vpop.f32.mrf.mxu2 }
 0x1c2   :  { %v563_v16 = vadd.f32 %v1050_v54, %v562_v15  ;;  %v449_v21 = vmax.f32 %v403_v17, 0.0 }
 0x1c4   :  { %636 = vst [vmem:[%s1201_s7 + $0x20] sm:$0xff] %v563_v16 }
 0x1c7   :  { %v404_v18 = vpop.f32.mrf.mxu1 }
 0x1c8   :  { %v405_v19 = vadd.f32 %v1013_v4, %v404_v18 }
 0x1c9   :  { %v564_v20 = vpop.f32.mrf.mxu2 }
 0x1ca   :  { %v450_v22 = vmax.f32 %v405_v19, 0.0  ;;  %v565_v23 = vadd.f32 %v1050_v54, %v564_v20 }
 0x1cc   :  { %637 = vst [vmem:[%s1201_s7 + $0x28] sm:$0xff] %v565_v23  ;;  %v470_v24 = vpack.c.bf16 %v450_v22, %v449_v21 }
 0x1ce   :  { %606 = vmatmul.bf16.gmra.mxu2 %v470_v24 }
 0x1d1   :  { %v567_v25 = vpop.f32.mrf.mxu2 }
 0x1d2   :  { %v568_v26 = vadd.f32 %v1050_v54, %v567_v25 }
 0x1d4   :  { %638 = vst [vmem:[%s1201_s7 + $0x30] sm:$0xff] %v568_v26 }
 0x1d5   :  { %v407_v27 = vpop.f32.mrf.mxu3 }
 0x1d6   :  { %v408_v30 = vadd.f32 %v1013_v4, %v407_v27 }
 0x1d8   :  { %v451_v33 = vmax.f32 %v408_v30, 0.0 }
 0x1d9   :  { %v569_v28 = vpop.f32.mrf.mxu2 }
 0x1da   :  { %v570_v29 = vadd.f32 %v1050_v54, %v569_v28 }
 0x1dc   :  { %639 = vst [vmem:[%s1201_s7 + $0x38] sm:$0xff] %v570_v29 }
 0x1dd   :  { %v409_v31 = vpop.f32.mrf.mxu3 }
 0x1de   :  { %v410_v32 = vadd.f32 %v1013_v4, %v409_v31 }
 0x1e0   :  { %v452_v34 = vmax.f32 %v410_v32, 0.0 }
 0x1e1   :  { %v572_v35 = vpop.f32.mrf.mxu2 }
 0x1e2   :  { %v471_v36 = vpack.c.bf16 %v452_v34, %v451_v33  ;;  %v573_v37 = vadd.f32 %v1050_v54, %v572_v35 }
 0x1e4   :  { %640 = vst [vmem:[%s1201_s7 + $0x40] sm:$0xff] %v573_v37  ;;  %611 = vmatmul.bf16.vlgmr.msra.gmra.mxu3 %v471_v36 }
 0x1e5   :  { %v412_v39 = vpop.f32.mrf.mxu3 }
 0x1e6   :  { %v413_v42 = vadd.f32 %v1013_v4, %v412_v39 }
 0x1e8   :  { %v453_v45 = vmax.f32 %v413_v42, 0.0 }
 0x1e9   :  { %v574_v40 = vpop.f32.mrf.mxu2 }
 0x1ea   :  { %v575_v41 = vadd.f32 %v1050_v54, %v574_v40 }
 0x1ec   :  { %641 = vst [vmem:[%s1201_s7 + $0x48] sm:$0xff] %v575_v41 }
 0x1ed   :  { %v414_v43 = vpop.f32.mrf.mxu3 }
 0x1ee   :  { %v415_v44 = vadd.f32 %v1013_v4, %v414_v43 }
 0x1f0   :  { %v454_v46 = vmax.f32 %v415_v44, 0.0 }
 0x1f1   :  { %v577_v47 = vpop.f32.mrf.mxu2 }
 0x1f2   :  { %v578_v38 = vadd.f32 %v1050_v54, %v577_v47  ;;  %v472_v48 = vpack.c.bf16 %v454_v46, %v453_v45 }
 0x1f4   :  { %642 = vst [vmem:[%s1201_s7 + $0x50] sm:$0xff] %v578_v38  ;;  %616 = vmatmul.bf16.gmra.mxu3 %v472_v48 }
 0x1f5   :  { %v417_v49 = vpop.f32.mrf.mxu3 }
 0x1f6   :  { %v418_v52 = vadd.f32 %v1013_v4, %v417_v49 }
 0x1f8   :  { %v455_v56 = vmax.f32 %v418_v52, 0.0 }
 0x1f9   :  { %v579_v50 = vpop.f32.mrf.mxu2 }
 0x1fa   :  { %v580_v51 = vadd.f32 %v1050_v54, %v579_v50 }
 0x1fc   :  { %643 = vst [vmem:[%s1201_s7 + $0x58] sm:$0xff] %v580_v51 }
 0x1fd   :  { %v419_v53 = vpop.f32.mrf.mxu3 }
 0x1fe   :  { %v420_v55 = vadd.f32 %v1013_v4, %v419_v53 }
 0x200   :  { %v456_v57 = vmax.f32 %v420_v55, 0.0 }
 0x201   :  { %v582_v58 = vpop.f32.mrf.mxu2 }
 0x202   :  { %v583_v59 = vadd.f32 %v1050_v54, %v582_v58  ;;  %v473_v60 = vpack.c.bf16 %v456_v57, %v455_v56 }
 0x204   :  { %644 = vst [vmem:[%s1201_s7 + $0x60] sm:$0xff] %v583_v59  ;;  %621 = vmatmul.bf16.gmra.mxu3 %v473_v60 }
 0x205   :  { %v422_v61 = vpop.f32.mrf.mxu3 }
 0x206   :  { %v423_v0 = vadd.f32 %v1013_v4, %v422_v61 }
 0x208   :  { %v457_v3 = vmax.f32 %v423_v0, 0.0 }
 0x209   :  { %v584_v62 = vpop.f32.mrf.mxu2 }
 0x20a   :  { %v585_v63 = vadd.f32 %v1050_v54, %v584_v62 }
 0x20c   :  { %645 = vst [vmem:[%s1201_s7 + $0x68] sm:$0xff] %v585_v63 }
 0x20d   :  { %v424_v1 = vpop.f32.mrf.mxu3 }
 0x20e   :  { %v425_v2 = vadd.f32 %v1013_v4, %v424_v1 }
 0x210   :  { %v458_v5 = vmax.f32 %v425_v2, 0.0 }
 0x211   :  { %v587_v6 = vpop.f32.mrf.mxu2 }
 0x212   :  { %v588_v7 = vadd.f32 %v1050_v54, %v587_v6  ;;  %v474_v8 = vpack.c.bf16 %v458_v5, %v457_v3 }
 0x214   :  { %646 = vst [vmem:[%s1201_s7 + $0x70] sm:$0xff] %v588_v7  ;;  %626 = vmatmul.bf16.gmra.mxu3 %v474_v8 }
 0x219   :  { %v589_v9 = vpop.f32.mrf.mxu2 }
 0x21a   :  { %v590_v10 = vadd.f32 %v1050_v54, %v589_v9 }
 0x21c   :  { %647 = vst [vmem:[%s1201_s7 + $0x78] sm:$0xff] %v590_v10 }
 0x221   :  { %v592_v11 = vpop.f32.mrf.mxu2 }
 0x222   :  { %v593_v4 = vadd.f32 %v1050_v54, %v592_v11 }
 0x224   :  { %648 = vst [vmem:[%s1201_s7 + $0x80] sm:$0xff] %v593_v4 }
 0x229   :  { %v594_v12 = vpop.f32.mrf.mxu2 }
 0x22a   :  { %v595_v13 = vadd.f32 %v1050_v54, %v594_v12 }
 0x22c   :  { %649 = vst [vmem:[%s1201_s7 + $0x88] sm:$0xff] %v595_v13 }
 0x231   :  { %v597_v14 = vpop.f32.mrf.mxu2 }
 0x232   :  { %v598_v15 = vadd.f32 %v1050_v54, %v597_v14 }
 0x234   :  { %650 = vst [vmem:[%s1201_s7 + $0x90] sm:$0xff] %v598_v15 }
 0x239   :  { %v599_v16 = vpop.f32.mrf.mxu2 }
 0x23a   :  { %v600_v17 = vadd.f32 %v1050_v54, %v599_v16 }
 0x23c   :  { %651 = vst [vmem:[%s1201_s7 + $0x98] sm:$0xff] %v600_v17 }
 0x241   :  { %v602_v18 = vpop.f32.mrf.mxu2 }
 0x242   :  { %v603_v19 = vadd.f32 %v1050_v54, %v602_v18 }
 0x244   :  { %652 = vst [vmem:[%s1201_s7 + $0xa0] sm:$0xff] %v603_v19 }
 0x249   :  { %v604_v20 = vpop.f32.mrf.mxu2 }
 0x24a   :  { %v605_v21 = vadd.f32 %v1050_v54, %v604_v20 }
 0x24c   :  { %653 = vst [vmem:[%s1201_s7 + $0xa8] sm:$0xff] %v605_v21 }
 0x251   :  { %v607_v22 = vpop.f32.mrf.mxu2 }
 0x252   :  { %v608_v23 = vadd.f32 %v1050_v54, %v607_v22 }
 0x254   :  { %654 = vst [vmem:[%s1201_s7 + $0xb0] sm:$0xff] %v608_v23 }
 0x259   :  { %v609_v24 = vpop.f32.mrf.mxu2 }
 0x25a   :  { %v610_v25 = vadd.f32 %v1050_v54, %v609_v24 }
 0x25c   :  { %655 = vst [vmem:[%s1201_s7 + $0xb8] sm:$0xff] %v610_v25 }
 0x267   :  { %v612_v26 = vpop.f32.mrf.mxu3 }
 0x268   :  { %v613_v27 = vadd.f32 %v1050_v54, %v612_v26 }
 0x26a   :  { %656 = vst [vmem:[%s1201_s7 + $0xc0] sm:$0xff] %v613_v27 }
 0x26f   :  { %v614_v28 = vpop.f32.mrf.mxu3 }
 0x270   :  { %v615_v29 = vadd.f32 %v1050_v54, %v614_v28 }
 0x272   :  { %657 = vst [vmem:[%s1201_s7 + $0xc8] sm:$0xff] %v615_v29 }
 0x277   :  { %v617_v30 = vpop.f32.mrf.mxu3 }
 0x278   :  { %v618_v31 = vadd.f32 %v1050_v54, %v617_v30 }
 0x27a   :  { %658 = vst [vmem:[%s1201_s7 + $0xd0] sm:$0xff] %v618_v31 }
 0x27f   :  { %v619_v32 = vpop.f32.mrf.mxu3 }
 0x280   :  { %v620_v33 = vadd.f32 %v1050_v54, %v619_v32 }
 0x282   :  { %659 = vst [vmem:[%s1201_s7 + $0xd8] sm:$0xff] %v620_v33 }
 0x287   :  { %v622_v34 = vpop.f32.mrf.mxu3 }
 0x288   :  { %v623_v35 = vadd.f32 %v1050_v54, %v622_v34 }
 0x28a   :  { %660 = vst [vmem:[%s1201_s7 + $0xe0] sm:$0xff] %v623_v35 }
 0x28f   :  { %v624_v36 = vpop.f32.mrf.mxu3 }
 0x290   :  { %v625_v37 = vadd.f32 %v1050_v54, %v624_v36 }
 0x292   :  { %661 = vst [vmem:[%s1201_s7 + $0xe8] sm:$0xff] %v625_v37 }
 0x297   :  { %v627_v39 = vpop.f32.mrf.mxu3 }
 0x298   :  { %v628_v40 = vadd.f32 %v1050_v54, %v627_v39 }
 0x29a   :  { %662 = vst [vmem:[%s1201_s7 + $0xf0] sm:$0xff] %v628_v40 }
 0x29f   :  { %v629_v41 = vpop.f32.mrf.mxu3 }
 0x2a0   :  { %v630_v42 = vadd.f32 %v1050_v54, %v629_v41 }
 0x2a2   :  { %663 = vst [vmem:[%s1201_s7 + $0xf8] sm:$0xff] %v630_v42 }

</bundles_post_ra>
